<compile_context>
chip_gen: v6e
topology: v6e:2x2x1
jax: 0.10.0
libtpu: 0.0.40
codegen_flags: <defaults>
</compile_context>

<pallas_src>
import functools

import jax
import jax.numpy as jnp
from jax import lax
from jax.experimental import pallas as pl
from jax.experimental.pallas import tpu as pltpu


def _round_up(x, m):
    return (x + m - 1) // m * m


# ----------------------------- fused stride==1 kernel ------------------------
def _make_fused_kernel(K, Wp, Wcomp):
    """Conv as K*K shifted matmuls over a lane-flat (C, Hp*Wp) activation."""
    KK = K * K

    def kernel(w_ref, scale_ref, x_ref, o_ref):
        # w_ref     : (K*K, O_tile, C) bf16 sign weights (grid-invariant in n)
        # scale_ref : (O_tile, 1)      f32 per-output-channel mean|w|
        # x_ref     : (C, Xlen)        bf16 padded, row-flattened activations
        # o_ref     : (O_tile, Wcomp)  f32 output (junk cols sliced in wrapper)
        o_ref[...] = jnp.dot(w_ref[0], x_ref[:, 0:Wcomp],
                             preferred_element_type=jnp.float32)
        for kk in range(1, KK):
            kh, kw = divmod(kk, K)
            off = kh * Wp + kw                       # static lane offset
            o_ref[...] += jnp.dot(w_ref[kk], x_ref[:, off:off + Wcomp],
                                  preferred_element_type=jnp.float32)
        o_ref[...] = o_ref[...] * scale_ref[...]
    return kernel


def _fused_stride1(x, w_sign, scale, *, K, padding, out_chn, Hout, Wout):
    N, C, H, W = x.shape
    Hp, Wp = H + 2 * padding, W + 2 * padding
    KK = K * K

    # Lane-dense compute width (multiple of 128); the kernel computes a few
    # junk columns per output row (wrapped reads of zero-padded data) that are
    # sliced away afterwards.
    Wcomp = _round_up(Hout * Wp, 128)
    Xlen = _round_up((K - 1) * (Wp + 1) + Wcomp, 128)

    # ---- pick O tile so the double-buffered footprint fits v7x's 64 MiB ----
    def footprint(ot):
        return 2 * (max(C, 16) * Xlen * 2          # x block (bf16)
                    + KK * ot * max(C, 128) * 2    # weight block (bf16, padded)
                    + ot * 128 * 4                 # scale block
                    + ot * Wcomp * 4)              # output block (f32)

    O_tile = _round_up(out_chn, 8)
    while O_tile > 8 and footprint(O_tile) > 20 * 1024 * 1024:
        O_tile = max(8, _round_up(O_tile // 2, 8))
    O_pad = _round_up(out_chn, O_tile)

    # ---- weights: (K*K, O_pad, C) exact +-1/0 bf16, scale (O_pad, 1) f32 ----
    w_kk = jnp.transpose(w_sign, (2, 3, 0, 1)).reshape(KK, out_chn, C)
    if O_pad != out_chn:
        w_kk = jnp.pad(w_kk, ((0, 0), (0, O_pad - out_chn), (0, 0)))
        scale = jnp.pad(scale, ((0, O_pad - out_chn), (0, 0)))
    w_kk = w_kk.astype(jnp.bfloat16)

    # ---- activations: one spatial zero-pad, row-flatten, lane-tail pad ------
    xp = jnp.pad(x.astype(jnp.bfloat16),
                 ((0, 0), (0, 0), (padding, padding), (padding, padding)))
    xf = xp.reshape(N, C, Hp * Wp)
    xf = jnp.pad(xf, ((0, 0), (0, 0), (0, Xlen - Hp * Wp)))

    grid = (N, O_pad // O_tile)
    flops = 2 * N * O_pad * C * KK * Wcomp
    bytes_accessed = (N * C * Xlen * 2 + KK * O_pad * C * 2 + O_pad * 4
                      + N * O_pad * Wcomp * 4)

    out = pl.pallas_call(
        _make_fused_kernel(K, Wp, Wcomp),
        out_shape=jax.ShapeDtypeStruct((N, O_pad, Wcomp), jnp.float32),
        grid_spec=pltpu.PrefetchScalarGridSpec(
            num_scalar_prefetch=0,
            grid=grid,
            in_specs=[
                pl.BlockSpec((KK, O_tile, C), lambda n, o: (0, o, 0)),
                pl.BlockSpec((O_tile, 1), lambda n, o: (o, 0)),
                pl.BlockSpec((None, C, Xlen), lambda n, o: (n, 0, 0)),
            ],
            out_specs=pl.BlockSpec((None, O_tile, Wcomp),
                                   lambda n, o: (n, o, 0)),
        ),
        compiler_params=pltpu.CompilerParams(
            dimension_semantics=("parallel", "parallel"),
            vmem_limit_bytes=32 * 1024 * 1024),
        cost_estimate=pl.CostEstimate(flops=flops, transcendentals=0,
                                      bytes_accessed=bytes_accessed),
    )(w_kk, scale, xf)

    # (N, O_pad, Wcomp) -> drop pad channels / junk columns -> (N, O, Ho, Wo)
    out = out[:, :out_chn, :Hout * Wp].reshape(N, out_chn, Hout, Wp)
    return out[:, :, :, :Wout]


# ----------------------------- strided fallback (GEMM) -----------------------
def _im2col(x, kernel_size, stride, padding):
    """x: (N, C, H, W) -> (N, C*K*K, Hout*Wout), rows ordered (c, kh, kw)."""
    N, C, H, W = x.shape
    K = kernel_size
    Hout = (H + 2 * padding - K) // stride + 1
    Wout = (W + 2 * padding - K) // stride + 1
    xp = jnp.pad(x, ((0, 0), (0, 0), (padding, padding), (padding, padding)))
    slabs = []
    for kh in range(K):
        for kw in range(K):
            slabs.append(xp[:, :,
                            kh: kh + stride * (Hout - 1) + 1: stride,
                            kw: kw + stride * (Wout - 1) + 1: stride])
    p = jnp.stack(slabs, axis=2)                   # (N, C, K*K, Hout, Wout)
    return p.reshape(N, C * K * K, Hout * Wout), Hout, Wout


def _gemm_kernel(w_ref, scale_ref, p_ref, o_ref):
    acc = jnp.dot(w_ref[...], p_ref[...], preferred_element_type=jnp.float32)
    o_ref[...] = (acc * scale_ref[...]).astype(o_ref.dtype)


def _gemm_fallback(x, w_sign, scale, *, K, stride, padding, out_chn, Hout, Wout):
    # TODO(synk): fuse im2col for strided convs as well; this path materializes
    # per-sample patches (no batch transpose) and does one GEMM per sample.
    N, C, H, W = x.shape
    CKK = C * K * K
    HW = Hout * Wout
    patches, _, _ = _im2col(x.astype(jnp.bfloat16), K, stride, padding)
    HWc = _round_up(HW, 128)
    if HWc != HW:
        patches = jnp.pad(patches, ((0, 0), (0, 0), (0, HWc - HW)))

    O_pad = _round_up(out_chn, 8)
    w2 = w_sign.reshape(out_chn, CKK)
    if O_pad != out_chn:
        w2 = jnp.pad(w2, ((0, O_pad - out_chn), (0, 0)))
        scale = jnp.pad(scale, ((0, O_pad - out_chn), (0, 0)))
    w2 = w2.astype(jnp.bfloat16)

    out = pl.pallas_call(
        _gemm_kernel,
        out_shape=jax.ShapeDtypeStruct((N, O_pad, HWc), jnp.float32),
        grid_spec=pltpu.PrefetchScalarGridSpec(
            num_scalar_prefetch=0,
            grid=(N,),
            in_specs=[
                pl.BlockSpec((O_pad, CKK), lambda n: (0, 0)),
                pl.BlockSpec((O_pad, 1), lambda n: (0, 0)),
                pl.BlockSpec((None, CKK, HWc), lambda n: (n, 0, 0)),
            ],
            out_specs=pl.BlockSpec((None, O_pad, HWc), lambda n: (n, 0, 0)),
        ),
        compiler_params=pltpu.CompilerParams(
            dimension_semantics=("parallel",),
            vmem_limit_bytes=32 * 1024 * 1024),
    )(w2, scale, patches)
    return out[:, :out_chn, :HW].reshape(N, out_chn, Hout, Wout)


# ----------------------------- public wrapper --------------------------------
def hard_binary_conv(x, weights_flat, *, in_chn, out_chn, kernel_size=3,
                     stride=1, padding=1):
    """Pallas implementation of HardBinaryConv.forward.

    x            : (N, in_chn, H, W) float32, NCHW
    weights_flat : (in_chn*out_chn*K*K, 1) float32 (same storage as nn.Parameter)
    returns      : (N, out_chn, Hout, Wout) float32
    """
    N, C, H, W = x.shape
    assert C == in_chn
    K = kernel_size
    Hout = (H + 2 * padding - K) // stride + 1
    Wout = (W + 2 * padding - K) // stride + 1

    # ---- weight binarization, hoisted out of the per-tile path --------------
    w4 = weights_flat.reshape(out_chn, in_chn, K, K).astype(jnp.float32)
    scale = jnp.mean(jnp.abs(w4.reshape(out_chn, -1)), axis=1,
                     keepdims=True)                                # (O, 1) f32
    w_sign = jnp.sign(w4)                                          # exact +-1/0

    if stride == 1:
        return _fused_stride1(x, w_sign, scale, K=K, padding=padding,
                              out_chn=out_chn, Hout=Hout, Wout=Wout)
    return _gemm_fallback(x, w_sign, scale, K=K, stride=stride,
                          padding=padding, out_chn=out_chn,
                          Hout=Hout, Wout=Wout)


# ----------------------------- references ------------------------------------
def _reference_f32(x, weights_flat, *, in_chn, out_chn, kernel_size=3,
                   stride=1, padding=1):
    """Full-f32 JAX reference mirroring the PyTorch forward."""
    K = kernel_size
    w = weights_flat.reshape(out_chn, in_chn, K, K).astype(jnp.float32)
    scale = jnp.mean(jnp.abs(w), axis=(1, 2, 3), keepdims=True)
    w_bin = scale * jnp.sign(w)
    return lax.conv_general_dilated(
        x, w_bin, window_strides=(stride, stride),
        padding=[(padding, padding), (padding, padding)],
        dimension_numbers=("NCHW", "OIHW", "NCHW"),
        precision=lax.Precision.HIGHEST)


def _reference_bf16_act(x, weights_flat, *, in_chn, out_chn, kernel_size=3,
                        stride=1, padding=1):
    """Same math as the kernel (bf16 activations, f32 accumulation + scale)."""
    K = kernel_size
    CKK = in_chn * K * K
    w2d = weights_flat.reshape(out_chn, in_chn, K, K).reshape(out_chn, CKK)
    w2d = w2d.astype(jnp.float32)
    scale = jnp.mean(jnp.abs(w2d), axis=1, keepdims=True)
    patches, Hout, Wout = _im2col(x.astype(jnp.bfloat16), K, stride, padding)
    y = jnp.einsum("ok,nkl->nol", jnp.sign(w2d), patches.astype(jnp.float32),
                   precision=lax.Precision.HIGHEST)
    y = y * scale[None]
    return y.reshape(x.shape[0], out_chn, Hout, Wout)


if __name__ == "__main__":
    # Module config (small, consistent with HardBinaryConv defaults).
    in_chn, out_chn, K, stride, padding = 4, 8, 3, 1, 1
    N, H, W = 2, 16, 16

    key = jax.random.PRNGKey(0)
    kx, kw = jax.random.split(key)

    # nn.Parameter(torch.rand((num_weights, 1)) * 0.001) -> uniform [0, 0.001)
    num_weights = in_chn * out_chn * K * K
    weights_flat = jax.random.uniform(kw, (num_weights, 1), jnp.float32) * 0.001
    x = jax.random.normal(kx, (N, in_chn, H, W), jnp.float32)

    conv = functools.partial(hard_binary_conv, in_chn=in_chn, out_chn=out_chn,
                             kernel_size=K, stride=stride, padding=padding)
    y = jax.block_until_ready(conv(x, weights_flat))
    assert y.shape == (N, out_chn, H, W)

    # Tight check: kernel vs identical-precision JAX math (bf16 activations).
    y_tight = _reference_bf16_act(x, weights_flat, in_chn=in_chn,
                                  out_chn=out_chn, kernel_size=K,
                                  stride=stride, padding=padding)
    assert jnp.allclose(y, y_tight, atol=1e-5, rtol=1e-3), \
        "kernel != bf16-activation reference"

    # Semantics check: matches the full-f32 PyTorch forward; only activations
    # are bf16-quantized (sign weights are exact, scale applied in f32).
    y_f32 = _reference_f32(x, weights_flat, in_chn=in_chn, out_chn=out_chn,
                           kernel_size=K, stride=stride, padding=padding)
    assert jnp.allclose(y, y_f32, atol=5e-4, rtol=2e-2), \
        "kernel deviates from f32 reference"

    print("KERNEL_OK")
</pallas_src>

<mosaic_0001>
module attributes {stable_mosaic.version = 11 : i64} {
  func.func @kernel(%arg0: i32, %arg1: i32, %arg2: memref<9x8x4xbf16, #tpu.memory_space<vmem>>, %arg3: memref<8x1xf32, #tpu.memory_space<vmem>>, %arg4: memref<1x4x512xbf16, #tpu.memory_space<vmem>>, %arg5: memref<1x8x384xf32, #tpu.memory_space<vmem>>) attributes {dimension_semantics = [#tpu.dimension_semantics<parallel>, #tpu.dimension_semantics<parallel>], iteration_bounds = array<i64: 2, 1>, scalar_prefetch = 0 : i64, scratch_operands = 0 : i64, tpu.core_type = #tpu.core_type<tc>, window_params = [{transform_indices = @transform_0, window_bounds = array<i64: 9, 8, 4>}, {transform_indices = @transform_1, window_bounds = array<i64: 8, 1>}, {transform_indices = @transform_2, window_bounds = array<i64: 1, 4, 512>}, {transform_indices = @transform_3, window_bounds = array<i64: 1, 8, 384>}]} {
    %c0 = arith.constant 0 : index
    %c0_0 = arith.constant 0 : index
    %c0_1 = arith.constant 0 : index
    %0 = vector.load %arg2[%c0, %c0_0, %c0_1] : memref<9x8x4xbf16, #tpu.memory_space<vmem>>, vector<1x8x4xbf16>
    %1 = vector.shape_cast %0 : vector<1x8x4xbf16> to vector<8x4xbf16>
    %c0_2 = arith.constant 0 : index
    %c0_3 = arith.constant 0 : index
    %c0_4 = arith.constant 0 : index
    %2 = vector.load %arg4[%c0_2, %c0_3, %c0_4] : memref<1x4x512xbf16, #tpu.memory_space<vmem>>, vector<1x4x384xbf16>
    %3 = vector.shape_cast %2 : vector<1x4x384xbf16> to vector<4x384xbf16>
    %cst = arith.constant dense<0.000000e+00> : vector<8x384xf32>
    %4 = tpu.matmul %1, %3, %cst {dimension_numbers = #tpu.dot_dimension_numbers<[1], [0], [0], [1], [0, 0, 1, 1], [], []>} : vector<8x4xbf16>, vector<4x384xbf16>, vector<8x384xf32> -> vector<8x384xf32>
    %c0_5 = arith.constant 0 : index
    %c0_6 = arith.constant 0 : index
    %c0_7 = arith.constant 0 : index
    %5 = vector.load %arg5[%c0_5, %c0_6, %c0_7] : memref<1x8x384xf32, #tpu.memory_space<vmem>>, vector<1x8x384xf32>
    %6 = vector.shape_cast %5 : vector<1x8x384xf32> to vector<8x384xf32>
    %7 = vector.shape_cast %4 : vector<8x384xf32> to vector<1x8x384xf32>
    tpu.vector_store %arg5[%c0_5, %c0_6, %c0_7], %7 {strides = array<i32>} : memref<1x8x384xf32, #tpu.memory_space<vmem>>, vector<1x8x384xf32>,
    %c0_8 = arith.constant 0 : index
    %c0_9 = arith.constant 0 : index
    %c0_10 = arith.constant 0 : index
    %8 = vector.load %arg5[%c0_8, %c0_9, %c0_10] : memref<1x8x384xf32, #tpu.memory_space<vmem>>, vector<1x8x384xf32>
    %9 = vector.shape_cast %8 : vector<1x8x384xf32> to vector<8x384xf32>
    %c1 = arith.constant 1 : index
    %c0_11 = arith.constant 0 : index
    %c0_12 = arith.constant 0 : index
    %10 = vector.load %arg2[%c1, %c0_11, %c0_12] : memref<9x8x4xbf16, #tpu.memory_space<vmem>>, vector<1x8x4xbf16>
    %11 = vector.shape_cast %10 : vector<1x8x4xbf16> to vector<8x4xbf16>
    %c0_13 = arith.constant 0 : index
    %c0_14 = arith.constant 0 : index
    %c1_15 = arith.constant 1 : index
    %12 = vector.load %arg4[%c0_13, %c0_14, %c1_15] : memref<1x4x512xbf16, #tpu.memory_space<vmem>>, vector<1x4x384xbf16>
    %13 = vector.shape_cast %12 : vector<1x4x384xbf16> to vector<4x384xbf16>
    %cst_16 = arith.constant dense<0.000000e+00> : vector<8x384xf32>
    %14 = tpu.matmul %11, %13, %cst_16 {dimension_numbers = #tpu.dot_dimension_numbers<[1], [0], [0], [1], [0, 0, 1, 1], [], []>} : vector<8x4xbf16>, vector<4x384xbf16>, vector<8x384xf32> -> vector<8x384xf32>
    %15 = arith.addf %9, %14 : vector<8x384xf32>
    %c0_17 = arith.constant 0 : index
    %c0_18 = arith.constant 0 : index
    %c0_19 = arith.constant 0 : index
    %16 = vector.load %arg5[%c0_17, %c0_18, %c0_19] : memref<1x8x384xf32, #tpu.memory_space<vmem>>, vector<1x8x384xf32>
    %17 = vector.shape_cast %16 : vector<1x8x384xf32> to vector<8x384xf32>
    %18 = vector.shape_cast %15 : vector<8x384xf32> to vector<1x8x384xf32>
    tpu.vector_store %arg5[%c0_17, %c0_18, %c0_19], %18 {strides = array<i32>} : memref<1x8x384xf32, #tpu.memory_space<vmem>>, vector<1x8x384xf32>,
    %c0_20 = arith.constant 0 : index
    %c0_21 = arith.constant 0 : index
    %c0_22 = arith.constant 0 : index
    %19 = vector.load %arg5[%c0_20, %c0_21, %c0_22] : memref<1x8x384xf32, #tpu.memory_space<vmem>>, vector<1x8x384xf32>
    %20 = vector.shape_cast %19 : vector<1x8x384xf32> to vector<8x384xf32>
    %c2 = arith.constant 2 : index
    %c0_23 = arith.constant 0 : index
    %c0_24 = arith.constant 0 : index
    %21 = vector.load %arg2[%c2, %c0_23, %c0_24] : memref<9x8x4xbf16, #tpu.memory_space<vmem>>, vector<1x8x4xbf16>
    %22 = vector.shape_cast %21 : vector<1x8x4xbf16> to vector<8x4xbf16>
    %c0_25 = arith.constant 0 : index
    %c0_26 = arith.constant 0 : index
    %c2_27 = arith.constant 2 : index
    %23 = vector.load %arg4[%c0_25, %c0_26, %c2_27] : memref<1x4x512xbf16, #tpu.memory_space<vmem>>, vector<1x4x384xbf16>
    %24 = vector.shape_cast %23 : vector<1x4x384xbf16> to vector<4x384xbf16>
    %cst_28 = arith.constant dense<0.000000e+00> : vector<8x384xf32>
    %25 = tpu.matmul %22, %24, %cst_28 {dimension_numbers = #tpu.dot_dimension_numbers<[1], [0], [0], [1], [0, 0, 1, 1], [], []>} : vector<8x4xbf16>, vector<4x384xbf16>, vector<8x384xf32> -> vector<8x384xf32>
    %26 = arith.addf %20, %25 : vector<8x384xf32>
    %c0_29 = arith.constant 0 : index
    %c0_30 = arith.constant 0 : index
    %c0_31 = arith.constant 0 : index
    %27 = vector.load %arg5[%c0_29, %c0_30, %c0_31] : memref<1x8x384xf32, #tpu.memory_space<vmem>>, vector<1x8x384xf32>
    %28 = vector.shape_cast %27 : vector<1x8x384xf32> to vector<8x384xf32>
    %29 = vector.shape_cast %26 : vector<8x384xf32> to vector<1x8x384xf32>
    tpu.vector_store %arg5[%c0_29, %c0_30, %c0_31], %29 {strides = array<i32>} : memref<1x8x384xf32, #tpu.memory_space<vmem>>, vector<1x8x384xf32>,
    %c0_32 = arith.constant 0 : index
    %c0_33 = arith.constant 0 : index
    %c0_34 = arith.constant 0 : index
    %30 = vector.load %arg5[%c0_32, %c0_33, %c0_34] : memref<1x8x384xf32, #tpu.memory_space<vmem>>, vector<1x8x384xf32>
    %31 = vector.shape_cast %30 : vector<1x8x384xf32> to vector<8x384xf32>
    %c3 = arith.constant 3 : index
    %c0_35 = arith.constant 0 : index
    %c0_36 = arith.constant 0 : index
    %32 = vector.load %arg2[%c3, %c0_35, %c0_36] : memref<9x8x4xbf16, #tpu.memory_space<vmem>>, vector<1x8x4xbf16>
    %33 = vector.shape_cast %32 : vector<1x8x4xbf16> to vector<8x4xbf16>
    %c0_37 = arith.constant 0 : index
    %c0_38 = arith.constant 0 : index
    %c18 = arith.constant 18 : index
    %34 = vector.load %arg4[%c0_37, %c0_38, %c18] : memref<1x4x512xbf16, #tpu.memory_space<vmem>>, vector<1x4x384xbf16>
    %35 = vector.shape_cast %34 : vector<1x4x384xbf16> to vector<4x384xbf16>
    %cst_39 = arith.constant dense<0.000000e+00> : vector<8x384xf32>
    %36 = tpu.matmul %33, %35, %cst_39 {dimension_numbers = #tpu.dot_dimension_numbers<[1], [0], [0], [1], [0, 0, 1, 1], [], []>} : vector<8x4xbf16>, vector<4x384xbf16>, vector<8x384xf32> -> vector<8x384xf32>
    %37 = arith.addf %31, %36 : vector<8x384xf32>
    %c0_40 = arith.constant 0 : index
    %c0_41 = arith.constant 0 : index
    %c0_42 = arith.constant 0 : index
    %38 = vector.load %arg5[%c0_40, %c0_41, %c0_42] : memref<1x8x384xf32, #tpu.memory_space<vmem>>, vector<1x8x384xf32>
    %39 = vector.shape_cast %38 : vector<1x8x384xf32> to vector<8x384xf32>
    %40 = vector.shape_cast %37 : vector<8x384xf32> to vector<1x8x384xf32>
    tpu.vector_store %arg5[%c0_40, %c0_41, %c0_42], %40 {strides = array<i32>} : memref<1x8x384xf32, #tpu.memory_space<vmem>>, vector<1x8x384xf32>,
    %c0_43 = arith.constant 0 : index
    %c0_44 = arith.constant 0 : index
    %c0_45 = arith.constant 0 : index
    %41 = vector.load %arg5[%c0_43, %c0_44, %c0_45] : memref<1x8x384xf32, #tpu.memory_space<vmem>>, vector<1x8x384xf32>
    %42 = vector.shape_cast %41 : vector<1x8x384xf32> to vector<8x384xf32>
    %c4 = arith.constant 4 : index
    %c0_46 = arith.constant 0 : index
    %c0_47 = arith.constant 0 : index
    %43 = vector.load %arg2[%c4, %c0_46, %c0_47] : memref<9x8x4xbf16, #tpu.memory_space<vmem>>, vector<1x8x4xbf16>
    %44 = vector.shape_cast %43 : vector<1x8x4xbf16> to vector<8x4xbf16>
    %c0_48 = arith.constant 0 : index
    %c0_49 = arith.constant 0 : index
    %c19 = arith.constant 19 : index
    %45 = vector.load %arg4[%c0_48, %c0_49, %c19] : memref<1x4x512xbf16, #tpu.memory_space<vmem>>, vector<1x4x384xbf16>
    %46 = vector.shape_cast %45 : vector<1x4x384xbf16> to vector<4x384xbf16>
    %cst_50 = arith.constant dense<0.000000e+00> : vector<8x384xf32>
    %47 = tpu.matmul %44, %46, %cst_50 {dimension_numbers = #tpu.dot_dimension_numbers<[1], [0], [0], [1], [0, 0, 1, 1], [], []>} : vector<8x4xbf16>, vector<4x384xbf16>, vector<8x384xf32> -> vector<8x384xf32>
    %48 = arith.addf %42, %47 : vector<8x384xf32>
    %c0_51 = arith.constant 0 : index
    %c0_52 = arith.constant 0 : index
    %c0_53 = arith.constant 0 : index
    %49 = vector.load %arg5[%c0_51, %c0_52, %c0_53] : memref<1x8x384xf32, #tpu.memory_space<vmem>>, vector<1x8x384xf32>
    %50 = vector.shape_cast %49 : vector<1x8x384xf32> to vector<8x384xf32>
    %51 = vector.shape_cast %48 : vector<8x384xf32> to vector<1x8x384xf32>
    tpu.vector_store %arg5[%c0_51, %c0_52, %c0_53], %51 {strides = array<i32>} : memref<1x8x384xf32, #tpu.memory_space<vmem>>, vector<1x8x384xf32>,
    %c0_54 = arith.constant 0 : index
    %c0_55 = arith.constant 0 : index
    %c0_56 = arith.constant 0 : index
    %52 = vector.load %arg5[%c0_54, %c0_55, %c0_56] : memref<1x8x384xf32, #tpu.memory_space<vmem>>, vector<1x8x384xf32>
    %53 = vector.shape_cast %52 : vector<1x8x384xf32> to vector<8x384xf32>
    %c5 = arith.constant 5 : index
    %c0_57 = arith.constant 0 : index
    %c0_58 = arith.constant 0 : index
    %54 = vector.load %arg2[%c5, %c0_57, %c0_58] : memref<9x8x4xbf16, #tpu.memory_space<vmem>>, vector<1x8x4xbf16>
    %55 = vector.shape_cast %54 : vector<1x8x4xbf16> to vector<8x4xbf16>
    %c0_59 = arith.constant 0 : index
    %c0_60 = arith.constant 0 : index
    %c20 = arith.constant 20 : index
    %56 = vector.load %arg4[%c0_59, %c0_60, %c20] : memref<1x4x512xbf16, #tpu.memory_space<vmem>>, vector<1x4x384xbf16>
    %57 = vector.shape_cast %56 : vector<1x4x384xbf16> to vector<4x384xbf16>
    %cst_61 = arith.constant dense<0.000000e+00> : vector<8x384xf32>
    %58 = tpu.matmul %55, %57, %cst_61 {dimension_numbers = #tpu.dot_dimension_numbers<[1], [0], [0], [1], [0, 0, 1, 1], [], []>} : vector<8x4xbf16>, vector<4x384xbf16>, vector<8x384xf32> -> vector<8x384xf32>
    %59 = arith.addf %53, %58 : vector<8x384xf32>
    %c0_62 = arith.constant 0 : index
    %c0_63 = arith.constant 0 : index
    %c0_64 = arith.constant 0 : index
    %60 = vector.load %arg5[%c0_62, %c0_63, %c0_64] : memref<1x8x384xf32, #tpu.memory_space<vmem>>, vector<1x8x384xf32>
    %61 = vector.shape_cast %60 : vector<1x8x384xf32> to vector<8x384xf32>
    %62 = vector.shape_cast %59 : vector<8x384xf32> to vector<1x8x384xf32>
    tpu.vector_store %arg5[%c0_62, %c0_63, %c0_64], %62 {strides = array<i32>} : memref<1x8x384xf32, #tpu.memory_space<vmem>>, vector<1x8x384xf32>,
    %c0_65 = arith.constant 0 : index
    %c0_66 = arith.constant 0 : index
    %c0_67 = arith.constant 0 : index
    %63 = vector.load %arg5[%c0_65, %c0_66, %c0_67] : memref<1x8x384xf32, #tpu.memory_space<vmem>>, vector<1x8x384xf32>
    %64 = vector.shape_cast %63 : vector<1x8x384xf32> to vector<8x384xf32>
    %c6 = arith.constant 6 : index
    %c0_68 = arith.constant 0 : index
    %c0_69 = arith.constant 0 : index
    %65 = vector.load %arg2[%c6, %c0_68, %c0_69] : memref<9x8x4xbf16, #tpu.memory_space<vmem>>, vector<1x8x4xbf16>
    %66 = vector.shape_cast %65 : vector<1x8x4xbf16> to vector<8x4xbf16>
    %c0_70 = arith.constant 0 : index
    %c0_71 = arith.constant 0 : index
    %c36 = arith.constant 36 : index
    %67 = vector.load %arg4[%c0_70, %c0_71, %c36] : memref<1x4x512xbf16, #tpu.memory_space<vmem>>, vector<1x4x384xbf16>
    %68 = vector.shape_cast %67 : vector<1x4x384xbf16> to vector<4x384xbf16>
    %cst_72 = arith.constant dense<0.000000e+00> : vector<8x384xf32>
    %69 = tpu.matmul %66, %68, %cst_72 {dimension_numbers = #tpu.dot_dimension_numbers<[1], [0], [0], [1], [0, 0, 1, 1], [], []>} : vector<8x4xbf16>, vector<4x384xbf16>, vector<8x384xf32> -> vector<8x384xf32>
    %70 = arith.addf %64, %69 : vector<8x384xf32>
    %c0_73 = arith.constant 0 : index
    %c0_74 = arith.constant 0 : index
    %c0_75 = arith.constant 0 : index
    %71 = vector.load %arg5[%c0_73, %c0_74, %c0_75] : memref<1x8x384xf32, #tpu.memory_space<vmem>>, vector<1x8x384xf32>
    %72 = vector.shape_cast %71 : vector<1x8x384xf32> to vector<8x384xf32>
    %73 = vector.shape_cast %70 : vector<8x384xf32> to vector<1x8x384xf32>
    tpu.vector_store %arg5[%c0_73, %c0_74, %c0_75], %73 {strides = array<i32>} : memref<1x8x384xf32, #tpu.memory_space<vmem>>, vector<1x8x384xf32>,
    %c0_76 = arith.constant 0 : index
    %c0_77 = arith.constant 0 : index
    %c0_78 = arith.constant 0 : index
    %74 = vector.load %arg5[%c0_76, %c0_77, %c0_78] : memref<1x8x384xf32, #tpu.memory_space<vmem>>, vector<1x8x384xf32>
    %75 = vector.shape_cast %74 : vector<1x8x384xf32> to vector<8x384xf32>
    %c7 = arith.constant 7 : index
    %c0_79 = arith.constant 0 : index
    %c0_80 = arith.constant 0 : index
    %76 = vector.load %arg2[%c7, %c0_79, %c0_80] : memref<9x8x4xbf16, #tpu.memory_space<vmem>>, vector<1x8x4xbf16>
    %77 = vector.shape_cast %76 : vector<1x8x4xbf16> to vector<8x4xbf16>
    %c0_81 = arith.constant 0 : index
    %c0_82 = arith.constant 0 : index
    %c37 = arith.constant 37 : index
    %78 = vector.load %arg4[%c0_81, %c0_82, %c37] : memref<1x4x512xbf16, #tpu.memory_space<vmem>>, vector<1x4x384xbf16>
    %79 = vector.shape_cast %78 : vector<1x4x384xbf16> to vector<4x384xbf16>
    %cst_83 = arith.constant dense<0.000000e+00> : vector<8x384xf32>
    %80 = tpu.matmul %77, %79, %cst_83 {dimension_numbers = #tpu.dot_dimension_numbers<[1], [0], [0], [1], [0, 0, 1, 1], [], []>} : vector<8x4xbf16>, vector<4x384xbf16>, vector<8x384xf32> -> vector<8x384xf32>
    %81 = arith.addf %75, %80 : vector<8x384xf32>
    %c0_84 = arith.constant 0 : index
    %c0_85 = arith.constant 0 : index
    %c0_86 = arith.constant 0 : index
    %82 = vector.load %arg5[%c0_84, %c0_85, %c0_86] : memref<1x8x384xf32, #tpu.memory_space<vmem>>, vector<1x8x384xf32>
    %83 = vector.shape_cast %82 : vector<1x8x384xf32> to vector<8x384xf32>
    %84 = vector.shape_cast %81 : vector<8x384xf32> to vector<1x8x384xf32>
    tpu.vector_store %arg5[%c0_84, %c0_85, %c0_86], %84 {strides = array<i32>} : memref<1x8x384xf32, #tpu.memory_space<vmem>>, vector<1x8x384xf32>,
    %c0_87 = arith.constant 0 : index
    %c0_88 = arith.constant 0 : index
    %c0_89 = arith.constant 0 : index
    %85 = vector.load %arg5[%c0_87, %c0_88, %c0_89] : memref<1x8x384xf32, #tpu.memory_space<vmem>>, vector<1x8x384xf32>
    %86 = vector.shape_cast %85 : vector<1x8x384xf32> to vector<8x384xf32>
    %c8 = arith.constant 8 : index
    %c0_90 = arith.constant 0 : index
    %c0_91 = arith.constant 0 : index
    %87 = vector.load %arg2[%c8, %c0_90, %c0_91] : memref<9x8x4xbf16, #tpu.memory_space<vmem>>, vector<1x8x4xbf16>
    %88 = vector.shape_cast %87 : vector<1x8x4xbf16> to vector<8x4xbf16>
    %c0_92 = arith.constant 0 : index
    %c0_93 = arith.constant 0 : index
    %c38 = arith.constant 38 : index
    %89 = vector.load %arg4[%c0_92, %c0_93, %c38] : memref<1x4x512xbf16, #tpu.memory_space<vmem>>, vector<1x4x384xbf16>
    %90 = vector.shape_cast %89 : vector<1x4x384xbf16> to vector<4x384xbf16>
    %cst_94 = arith.constant dense<0.000000e+00> : vector<8x384xf32>
    %91 = tpu.matmul %88, %90, %cst_94 {dimension_numbers = #tpu.dot_dimension_numbers<[1], [0], [0], [1], [0, 0, 1, 1], [], []>} : vector<8x4xbf16>, vector<4x384xbf16>, vector<8x384xf32> -> vector<8x384xf32>
    %92 = arith.addf %86, %91 : vector<8x384xf32>
    %c0_95 = arith.constant 0 : index
    %c0_96 = arith.constant 0 : index
    %c0_97 = arith.constant 0 : index
    %93 = vector.load %arg5[%c0_95, %c0_96, %c0_97] : memref<1x8x384xf32, #tpu.memory_space<vmem>>, vector<1x8x384xf32>
    %94 = vector.shape_cast %93 : vector<1x8x384xf32> to vector<8x384xf32>
    %95 = vector.shape_cast %92 : vector<8x384xf32> to vector<1x8x384xf32>
    tpu.vector_store %arg5[%c0_95, %c0_96, %c0_97], %95 {strides = array<i32>} : memref<1x8x384xf32, #tpu.memory_space<vmem>>, vector<1x8x384xf32>,
    %c0_98 = arith.constant 0 : index
    %c0_99 = arith.constant 0 : index
    %c0_100 = arith.constant 0 : index
    %96 = vector.load %arg5[%c0_98, %c0_99, %c0_100] : memref<1x8x384xf32, #tpu.memory_space<vmem>>, vector<1x8x384xf32>
    %97 = vector.shape_cast %96 : vector<1x8x384xf32> to vector<8x384xf32>
    %c0_101 = arith.constant 0 : index
    %c0_102 = arith.constant 0 : index
    %98 = vector.load %arg3[%c0_101, %c0_102] : memref<8x1xf32, #tpu.memory_space<vmem>>, vector<8x1xf32>
    %99 = vector.broadcast %98 : vector<8x1xf32> to vector<8x384xf32>
    %100 = arith.mulf %97, %99 : vector<8x384xf32>
    %c0_103 = arith.constant 0 : index
    %c0_104 = arith.constant 0 : index
    %c0_105 = arith.constant 0 : index
    %101 = vector.load %arg5[%c0_103, %c0_104, %c0_105] : memref<1x8x384xf32, #tpu.memory_space<vmem>>, vector<1x8x384xf32>
    %102 = vector.shape_cast %101 : vector<1x8x384xf32> to vector<8x384xf32>
    %103 = vector.shape_cast %100 : vector<8x384xf32> to vector<1x8x384xf32>
    tpu.vector_store %arg5[%c0_103, %c0_104, %c0_105], %103 {strides = array<i32>} : memref<1x8x384xf32, #tpu.memory_space<vmem>>, vector<1x8x384xf32>,
    return
  }
  func.func @transform_0(%arg0: i32, %arg1: i32) -> (i32, i32, i32) {
    %c0_i32 = arith.constant 0 : i32
    %c0_i32_0 = arith.constant 0 : i32
    %c0_i32_1 = arith.constant 0 : i32
    return %c0_i32, %arg1, %c0_i32_0 : i32, i32, i32
  }
  func.func @transform_1(%arg0: i32, %arg1: i32) -> (i32, i32) {
    %c0_i32 = arith.constant 0 : i32
    %c0_i32_0 = arith.constant 0 : i32
    return %arg1, %c0_i32 : i32, i32
  }
  func.func @transform_2(%arg0: i32, %arg1: i32) -> (i32, i32, i32) {
    %c0_i32 = arith.constant 0 : i32
    %c0_i32_0 = arith.constant 0 : i32
    %c0_i32_1 = arith.constant 0 : i32
    return %arg0, %c0_i32, %c0_i32_0 : i32, i32, i32
  }
  func.func @transform_3(%arg0: i32, %arg1: i32) -> (i32, i32, i32) {
    %c0_i32 = arith.constant 0 : i32
    %c0_i32_0 = arith.constant 0 : i32
    return %arg0, %arg1, %c0_i32 : i32, i32, i32
  }
}

</mosaic_0001>

<bundles_post_ra>
// kernel: tpu_custom_call.1
= control target key start
LH: loop header
LB: loop body
LE: loop exit
PB: predicated region body
PF: predicated region fallthrough
CT: control target
= control target key end

     0   :  { %8 = vsyncpa [#allocation3], 0  ;;  %s2077_s0 = inlined_call_operand.vmem [shape: bf16[9,8,4], index: 0, kind: input, shape index: {}]   ;;  %s2078_s1 = inlined_call_operand.vmem [shape: f32[8,1], index: 1, kind: input, shape index: {}]   ;;  %s2079_s2 = inlined_call_operand.vmem [shape: bf16[2,4,512], index: 2, kind: input, shape index: {}]   ;;  %s2080_s3 = inlined_call_operand.hbm [shape: f32[2,8,384], index: 3, kind: output, shape index: {}]  }
   0x1   :  { %10 = vsyncpa [#allocation3 + $0x1], 0  ;;  %s1850_s12 = smov 0   ;;  %s1852_s13 = smov 0  }
   0x2   :  { %s1854_s14 = smov 0   ;;  %s1856_s15 = smov 0  }
   0x3   :  { %s1858_s16 = smov 0   ;;  %s1860_s17 = smov 0  }
   0x4 LB: > { %s1547_s18 = sadd.s32 4294967295, %s1815_s17   ;;  %s1548_s19 = sadd.s32 4294967294, %s1815_s17   ;;  %s1815_s17 = sphi %s1860_s17, %s16_s17   ;;  %s1811_s16 = sphi %s1858_s16, %s2087_s16   ;;  %s1807_s15 = sphi %s1856_s15, %s2086_s15   ;;  %s1803_s14 = sphi %s1854_s14, %s2085_s14   ;;  %s1799_s13 = sphi %s1852_s13, %s2084_s13   ;;  %s1795_s12 = sphi %s1850_s12, %s2083_s12  }
   0x5   : > { %s28_s20 = sadd.s32 1, %s1811_s16  ;;  %s115_s21 = sadd.s32 1, %s1803_s14 }
   0x6   : > { %p30_p0 = scmp.ge.s32.totalorder %s28_s20, 2  ;;  %p125_p1 = scmp.ne.s32.totalorder %s1803_s14, %s1799_s13 }
   0x7   : > { %p126_p2 = scmp.eq.s32.totalorder %s1547_s18, 1  ;;  %p131_p3 = scmp.ne.s32.totalorder %s1799_s13, %s1795_s12 }
   0x8   : > { %s2089_s20 = smov (%p30_p0, %s28_s20), 0  ;;  %p132_p5 = scmp.eq.s32.totalorder %s1548_s19, 1 }
   0x9   : > { %p1890_p4 = por %p126_p2, %p125_p1  ;;  %s110_s23 = ssub.s32 %s1811_s16, %s2089_s20 }
   0xa   : > { %p1553_p6 = scmp.ge.s32.totalorder %s1815_s17, 1  ;;  %p113_p7 = scmp.eq.s32.totalorder %s110_s23, 0 }
   0xb   : > { %p1897_p8 = por %p132_p5, %p131_p3  ;;  %p172_p9 = scmp.lt.s32.totalorder %s1815_s17, 3 }
   0xc   : > { %s1903_s25 = scalar_select %p113_p7, %s1803_s14, %s115_s21  }
   0xd   : > { %p173_p10 = pnand %p1553_p6, %p172_p9 }
   0xe   : > { %p212_p11 = scmp.lt.s32.totalorder (!%p173_p10), %s1807_s15, 1  ;;  %s1821_s4 = smov (!%p173_p10), 127  }
   0xf   : > { %176 = sbr.rel (%p173_p10) target bundleno = 421 (0x1a5), region = 32  ;;  %s1822_s7 = smov (!%p173_p10), 126  }
  0x10   : > { %s1823_s8 = smov (!%p173_p10), 110   ;;  %s1824_s9 = smov (!%p173_p10), 109  }
  0x11   : > { %s1825_s10 = smov (!%p173_p10), 108   ;;  %s1826_s11 = smov (!%p173_p10), 92  }
  0x12   : > { %s1827_s18 = smov (!%p173_p10), 91   ;;  %s1828_s19 = smov (!%p173_p10), 90  }
  0x13   : > { %s201_s23 = sand.u32 (!%p173_p10), 1, %s1799_s13  }
  0x14   : > { %v225_v0 = vlaneseq  ;;  %v1817_v1 = vmov 1983009808   ;;  %v1818_v3 = vmov 0.0   ;;  %s213_s26 = scalar_select %p212_p11, %s1807_s15, 1  ;;  %v1819_v5 = vmov 0   ;;  %v1418_v22 = vld [vmem:[%s2078_s1] sm:$0xff] }
  0x15   : > { %v223_v2 = vunpack.c.l.s4 %v1817_v1  ;;  %1613 = vmatprep.subr.bf16.mxu1 %v1818_v3  ;;  %283 = vmatprep.mubr.bf16.mxu0 %v1819_v5  ;;  %vm1820_vm0 = vmmov 0   ;;  %vm241_vm1 = vcmask 1041408   ;;  %v218_v21 = vld [vmem:[%s2077_s0] sm:$0xf]  ;;  %vm237_vm2 = vcmask 31744  }
  0x16   : > { %v226_v4 = vshrl.u32 %v225_v0, 7  ;;  %1736 = vset.pattern.permute.xlu0 %v1819_v5  ;;  %1615 = vmatprep.mubr.msk.bf16.mxu1 %vm1820_vm0, %v1818_v3  ;;  %s1594_s27 = sshll.u32 %s213_s26, 3  ;;  %vm367_vm3 = vcmask 1039360   ;;  %v1559_v31 = vld [vmem:[%s2077_s0 + $0x4] sm:$0xf]  ;;  %vm502_vm4 = vcmask 1031168  }
  0x17   : > { %v224_v6 = vunpack.c.0.s8 %v223_v2  ;;  %s216_s30 = scalar_lea.vmem %s2079_s2, %s1594_s27  ;;  %v1563_v41 = vld [vmem:[%s2077_s0 + $0x8] sm:$0xf]  ;;  %vm637_vm5 = vcmask 900096   ;;  %v1567_v51 = vld [vmem:[%s2077_s0 + $0xc] sm:$0xf]  ;;  %vm772_vm6 = vcmask 891904  }
  0x18   : > { %v340_v8 = vld [vmem:[%s216_s30] sm:$0xff]  ;;  %v1571_v61 = vld [vmem:[%s2077_s0 + $0x10] sm:$0xf]  ;;  %vm907_vm7 = vcmask 883712   ;;  %vm1042_vm8 = vcmask 752640   ;;  %vm1177_vm9 = vcmask 744448  }
  0x19   : > { %v227_v7 = vsub.s32 %v224_v6, %v226_v4  ;;  %v219_v9 = vld [vmem:[%s216_s30] sm:$0x3f]  ;;  %v342_v11 = vcombine.high %v340_v8, %v340_v8  ;;  %vm1312_vm10 = vcmask 736256   ;;  %s1667_s26 = smul.u32 24, %s201_s23 }
  0x1a   : > { %v221_v13 = vcombine.high %v219_v9, %v219_v9  ;;  %s1668_s27 = smul.u32 384, %s1807_s15  ;;  %s1431_s15 = scalar_lea.sflag [#allocation3], %s201_s23 }
  0x1b   : > { %v349_v10 = vrot.slane %v340_v8, %v227_v7  ;;  %v228_v12 = vrot.slane %v219_v9, %v227_v7  ;;  %v356_v15 = vrot.slane %v342_v11, %v227_v7  ;;  %v1575_v9 = vld [vmem:[%s2077_s0 + $0x14] sm:$0xf]  ;;  %s203_s28 = scalar_lea.vmem [#allocation2], %s1667_s26 }
  0x1c   : > { %v235_v18 = vrot.slane %v221_v13, %v227_v7  ;;  %s1447_s29 = sshll.u32 %s203_s28, 4  ;;  %s2029_s5 = scalar_lea.hbm %s2080_s3, %s1668_s27  ;;  %s2031_s29 = int_to_ptr.vmem [resolvable:$true] %s1447_s29 }
  0x1d   : > { %359 = vrot.lane.b32.xlu0 %v349_v10, %s1821_s4  ;;  %v357_v14 = vcombine.high %v349_v10, %v349_v10  ;;  %v236_v16 = vcombine.high %v228_v12, %v228_v12  ;;  %v243_v17 = vsel %vm241_vm1, %v228_v12, 0  ;;  %363 = vrot.lane.b32.xlu1 %v356_v15, %s1821_s4  ;;  %v358_v19 = vcombine.high %v356_v15, %v356_v15  ;;  %s1739_s6 = scalar_lea.vmem %s2031_s29, 384 }
  0x1e   : > { %v249_v20 = vsel %vm241_vm1, %v235_v18, 0  ;;  %p1740_p12 = scmp.ne.s32.totalorder %s2031_s29, %s1739_s6 }
  0x1f   : > { %1556 = vmatprep.subr.msk.bf16.mxu0 %vm241_vm1, %v236_v16  ;;  %1614 = vmatpush3.bf16.msra.mxu1 %v249_v20 }
  0x20   : > { %266 = vmatpush1.bf16.msra.mxu0 %v243_v17  ;;  %1619 = vmatprep.subr.bf16.mxu1 %v1818_v3  ;;  %p1741_p13 = pnand %p1740_p12, %p1890_p4 }
  0x21   : > { %361 = vrot.lane.b32.xlu0 %v357_v14, %s1821_s4  ;;  %365 = vrot.lane.b32.xlu1 %v358_v19, %s1821_s4 }
  0x22   : > { %1616 = vmatmul.mubr.msk.bf16.vlgmr.msra.gmra.mxu1 %vm237_vm2, %v218_v21  ;;  %p1742_p0 = pneg %p1741_p13 }
  0x23   : > { %1557 = vmatmul.mubr.msk.bf16.vlgmr.msra.gmra.mxu0 %vm237_vm2, %v218_v21  ;;  %1621 = vmatprep.mubr.msk.bf16.mxu1 %vm1820_vm0, %v1818_v3 }
  0x24   : > { %415 = vmatprep.mubr.bf16.mxu0 %v1819_v5 }
  0x25   : > { %494 = vrot.lane.b32.xlu0 %v349_v10, %s1822_s7  ;;  %496 = vrot.lane.b32.xlu1 %v357_v14, %s1822_s7 }
  0x29   : > { %498 = vrot.lane.b32.xlu0 %v356_v15, %s1822_s7  ;;  %500 = vrot.lane.b32.xlu1 %v358_v19, %s1822_s7  ;;  %s1829_s7 = smov [#allocation2]  }
  0x2d   : > { %629 = vrot.lane.b32.xlu0 %v349_v10, %s1823_s8  ;;  %631 = vrot.lane.b32.xlu1 %v357_v14, %s1823_s8 }
  0x31   : > { %633 = vrot.lane.b32.xlu0 %v356_v15, %s1823_s8  ;;  %635 = vrot.lane.b32.xlu1 %v358_v19, %s1823_s8  ;;  %s1743_s8 = sshll.u32 %s1829_s7, 4  ;;  %s1744_s8 = int_to_ptr.vmem [resolvable:$false] %s1743_s8 }
  0x32   : > { %p1746_p1 = scmp.lt.s32.totalorder %s2031_s29, %s1744_s8 }
  0x35   : > { %764 = vrot.lane.b32.xlu0 %v349_v10, %s1824_s9  ;;  %766 = vrot.lane.b32.xlu1 %v357_v14, %s1824_s9 }
  0x39   : > { %768 = vrot.lane.b32.xlu0 %v356_v15, %s1824_s9  ;;  %770 = vrot.lane.b32.xlu1 %v358_v19, %s1824_s9  ;;  %s1745_s9 = scalar_lea.vmem %s1744_s8, 768 }
  0x3a   : > { %p1747_p2 = scmp.lt.s32.totalorder %s1745_s9, %s1739_s6 }
  0x3c   : > { %p1748_p3 = por %p1747_p2, %p1746_p1 }
  0x3d   : > { %899 = vrot.lane.b32.xlu0 %v349_v10, %s1825_s10  ;;  %901 = vrot.lane.b32.xlu1 %v357_v14, %s1825_s10 }
  0x3e   : > { %p1749_p5 = pnand %p1748_p3, %p1742_p0 }
  0x41   : > { %903 = vrot.lane.b32.xlu0 %v356_v15, %s1825_s10  ;;  %905 = vrot.lane.b32.xlu1 %v358_v19, %s1825_s10 }
  0x45   : > { %1034 = vrot.lane.b32.xlu0 %v349_v10, %s1826_s11  ;;  %1036 = vrot.lane.b32.xlu1 %v357_v14, %s1826_s11 }
  0x49   : > { %1038 = vrot.lane.b32.xlu0 %v356_v15, %s1826_s11  ;;  %1040 = vrot.lane.b32.xlu1 %v358_v19, %s1826_s11 }
  0x4d   : > { %1169 = vrot.lane.b32.xlu0 %v349_v10, %s1827_s18  ;;  %1171 = vrot.lane.b32.xlu1 %v357_v14, %s1827_s18 }
  0x51   : > { %1173 = vrot.lane.b32.xlu0 %v356_v15, %s1827_s18  ;;  %1175 = vrot.lane.b32.xlu1 %v358_v19, %s1827_s18 }
  0x55   : > { %1304 = vrot.lane.b32.xlu0 %v349_v10, %s1828_s19  ;;  %1306 = vrot.lane.b32.xlu1 %v357_v14, %s1828_s19 }
  0x59   : > { %1308 = vrot.lane.b32.xlu0 %v356_v15, %s1828_s19  ;;  %1310 = vrot.lane.b32.xlu1 %v358_v19, %s1828_s19  ;;  %v1579_v19 = vld [vmem:[%s2077_s0 + $0x18] sm:$0xf] }
  0x5d   : > { %1421 = vperm.xlu0 %1736, %v1418_v22  }
  0x8f   : > { %v360_v23 = vpop.permute.xlu0 %359  ;;  %v364_v24 = vpop.permute.xlu1 %363 }
  0x93   : > { %v362_v25 = vpop.permute.xlu0 %361  ;;  %v366_v29 = vpop.permute.xlu1 %365 }
  0x94   : > { %v368_v26 = vsel %vm367_vm3, %v360_v23, %v362_v25  ;;  %v369_v27 = vsel %vm367_vm3, %v362_v25, %v364_v24  ;;  %v370_v30 = vsel %vm367_vm3, %v364_v24, %v366_v29  ;;  %v1583_v29 = vld [vmem:[%s2077_s0 + $0x1c] sm:$0xf] }
  0x95   : > { %v375_v28 = vsel %vm241_vm1, %v368_v26, 0  ;;  %1560 = vmatprep.subr.msk.bf16.mxu0 %vm241_vm1, %v369_v27  ;;  %v381_v32 = vsel %vm241_vm1, %v370_v30, 0 }
  0x96   : > { %398 = vmatpush1.bf16.msra.mxu0 %v375_v28  ;;  %1620 = vmatpush3.bf16.msra.mxu1 %v381_v32 }
  0x97   : > { %v495_v33 = vpop.permute.xlu0 %494  ;;  %v497_v34 = vpop.permute.xlu1 %496  ;;  %1625 = vmatprep.subr.bf16.mxu1 %v1818_v3 }
  0x98   : > { %v503_v35 = vsel %vm502_vm4, %v495_v33, %v497_v34 }
  0x99   : > { %1561 = vmatmul.mubr.msk.bf16.vlgmr.msra.gmra.mxu0 %vm237_vm2, %v1559_v31  ;;  %1622 = vmatmul.mubr.msk.bf16.vlgmr.msra.gmra.mxu1 %vm237_vm2, %v1559_v31  ;;  %v510_v38 = vsel %vm241_vm1, %v503_v35, 0 }
  0x9a   : > { %550 = vmatprep.mubr.bf16.mxu0 %v1819_v5  ;;  %1627 = vmatprep.mubr.msk.bf16.mxu1 %vm1820_vm0, %v1818_v3 }
  0x9b   : > { %v499_v36 = vpop.permute.xlu0 %498  ;;  %v501_v39 = vpop.permute.xlu1 %500 }
  0x9c   : > { %v504_v37 = vsel %vm502_vm4, %v497_v34, %v499_v36  ;;  %v505_v40 = vsel %vm502_vm4, %v499_v36, %v501_v39  ;;  %v1587_v39 = vld [vmem:[%s2077_s0 + $0x20] sm:$0xf] }
  0x9d   : > { %1564 = vmatprep.subr.msk.bf16.mxu0 %vm241_vm1, %v504_v37  ;;  %v516_v42 = vsel %vm241_vm1, %v505_v40, 0 }
  0x9e   : > { %533 = vmatpush1.bf16.msra.mxu0 %v510_v38  ;;  %1626 = vmatpush3.bf16.msra.mxu1 %v516_v42 }
  0x9f   : > { %v630_v43 = vpop.permute.xlu0 %629  ;;  %v632_v44 = vpop.permute.xlu1 %631  ;;  %1631 = vmatprep.subr.bf16.mxu1 %v1818_v3 }
  0xa0   : > { %v638_v45 = vsel %vm637_vm5, %v630_v43, %v632_v44 }
  0xa1   : > { %1565 = vmatmul.mubr.msk.bf16.vlgmr.msra.gmra.mxu0 %vm237_vm2, %v1563_v41  ;;  %1628 = vmatmul.mubr.msk.bf16.vlgmr.msra.gmra.mxu1 %vm237_vm2, %v1563_v41  ;;  %v645_v48 = vsel %vm241_vm1, %v638_v45, 0 }
  0xa2   : > { %685 = vmatprep.mubr.bf16.mxu0 %v1819_v5  ;;  %1633 = vmatprep.mubr.msk.bf16.mxu1 %vm1820_vm0, %v1818_v3 }
  0xa3   : > { %v634_v46 = vpop.permute.xlu0 %633  ;;  %v636_v49 = vpop.permute.xlu1 %635 }
  0xa4   : > { %v639_v47 = vsel %vm637_vm5, %v632_v44, %v634_v46  ;;  %v640_v50 = vsel %vm637_vm5, %v634_v46, %v636_v49 }
  0xa5   : > { %1568 = vmatprep.subr.msk.bf16.mxu0 %vm241_vm1, %v639_v47  ;;  %v651_v52 = vsel %vm241_vm1, %v640_v50, 0 }
  0xa6   : > { %668 = vmatpush1.bf16.msra.mxu0 %v645_v48  ;;  %1632 = vmatpush3.bf16.msra.mxu1 %v651_v52 }
  0xa7   : > { %v765_v53 = vpop.permute.xlu0 %764  ;;  %v767_v54 = vpop.permute.xlu1 %766  ;;  %1637 = vmatprep.subr.bf16.mxu1 %v1818_v3 }
  0xa8   : > { %v773_v55 = vsel %vm772_vm6, %v765_v53, %v767_v54 }
  0xa9   : > { %1569 = vmatmul.mubr.msk.bf16.vlgmr.msra.gmra.mxu0 %vm237_vm2, %v1567_v51  ;;  %1634 = vmatmul.mubr.msk.bf16.vlgmr.msra.gmra.mxu1 %vm237_vm2, %v1567_v51  ;;  %v780_v58 = vsel %vm241_vm1, %v773_v55, 0 }
  0xaa   : > { %820 = vmatprep.mubr.bf16.mxu0 %v1819_v5  ;;  %1639 = vmatprep.mubr.msk.bf16.mxu1 %vm1820_vm0, %v1818_v3 }
  0xab   : > { %v769_v56 = vpop.permute.xlu0 %768  ;;  %v771_v59 = vpop.permute.xlu1 %770 }
  0xac   : > { %v774_v57 = vsel %vm772_vm6, %v767_v54, %v769_v56  ;;  %v775_v60 = vsel %vm772_vm6, %v769_v56, %v771_v59 }
  0xad   : > { %1572 = vmatprep.subr.msk.bf16.mxu0 %vm241_vm1, %v774_v57  ;;  %v786_v62 = vsel %vm241_vm1, %v775_v60, 0 }
  0xae   : > { %803 = vmatpush1.bf16.msra.mxu0 %v780_v58  ;;  %1638 = vmatpush3.bf16.msra.mxu1 %v786_v62 }
  0xaf   : > { %v900_v63 = vpop.permute.xlu0 %899  ;;  %v902_v0 = vpop.permute.xlu1 %901  ;;  %1643 = vmatprep.subr.bf16.mxu1 %v1818_v3 }
  0xb0   : > { %v908_v1 = vsel %vm907_vm7, %v900_v63, %v902_v0 }
  0xb1   : > { %1573 = vmatmul.mubr.msk.bf16.vlgmr.msra.gmra.mxu0 %vm237_vm2, %v1571_v61  ;;  %1640 = vmatmul.mubr.msk.bf16.vlgmr.msra.gmra.mxu1 %vm237_vm2, %v1571_v61  ;;  %v915_v6 = vsel %vm241_vm1, %v908_v1, 0 }
  0xb2   : > { %955 = vmatprep.mubr.bf16.mxu0 %v1819_v5  ;;  %1645 = vmatprep.mubr.msk.bf16.mxu1 %vm1820_vm0, %v1818_v3 }
  0xb3   : > { %v904_v2 = vpop.permute.xlu0 %903  ;;  %v906_v7 = vpop.permute.xlu1 %905 }
  0xb4   : > { %v909_v4 = vsel %vm907_vm7, %v902_v0, %v904_v2  ;;  %v910_v8 = vsel %vm907_vm7, %v904_v2, %v906_v7 }
  0xb5   : > { %1576 = vmatprep.subr.msk.bf16.mxu0 %vm241_vm1, %v909_v4  ;;  %v921_v10 = vsel %vm241_vm1, %v910_v8, 0 }
  0xb6   : > { %938 = vmatpush1.bf16.msra.mxu0 %v915_v6  ;;  %1644 = vmatpush3.bf16.msra.mxu1 %v921_v10 }
  0xb7   : > { %v1035_v11 = vpop.permute.xlu0 %1034  ;;  %v1037_v12 = vpop.permute.xlu1 %1036  ;;  %1649 = vmatprep.subr.bf16.mxu1 %v1818_v3 }
  0xb8   : > { %v1043_v13 = vsel %vm1042_vm8, %v1035_v11, %v1037_v12 }
  0xb9   : > { %1577 = vmatmul.mubr.msk.bf16.vlgmr.msra.gmra.mxu0 %vm237_vm2, %v1575_v9  ;;  %1646 = vmatmul.mubr.msk.bf16.vlgmr.msra.gmra.mxu1 %vm237_vm2, %v1575_v9  ;;  %v1050_v16 = vsel %vm241_vm1, %v1043_v13, 0 }
  0xba   : > { %1090 = vmatprep.mubr.bf16.mxu0 %v1819_v5  ;;  %1651 = vmatprep.mubr.msk.bf16.mxu1 %vm1820_vm0, %v1818_v3 }
  0xbb   : > { %v1039_v14 = vpop.permute.xlu0 %1038  ;;  %v1041_v17 = vpop.permute.xlu1 %1040 }
  0xbc   : > { %v1044_v15 = vsel %vm1042_vm8, %v1037_v12, %v1039_v14  ;;  %v1045_v18 = vsel %vm1042_vm8, %v1039_v14, %v1041_v17 }
  0xbd   : > { %1580 = vmatprep.subr.msk.bf16.mxu0 %vm241_vm1, %v1044_v15  ;;  %v1056_v20 = vsel %vm241_vm1, %v1045_v18, 0 }
  0xbe   : > { %1073 = vmatpush1.bf16.msra.mxu0 %v1050_v16  ;;  %1650 = vmatpush3.bf16.msra.mxu1 %v1056_v20 }
  0xbf   : > { %v1170_v21 = vpop.permute.xlu0 %1169  ;;  %v1172_v22 = vpop.permute.xlu1 %1171  ;;  %1655 = vmatprep.subr.bf16.mxu1 %v1818_v3 }
  0xc0   : > { %v1178_v23 = vsel %vm1177_vm9, %v1170_v21, %v1172_v22 }
  0xc1   : > { %1581 = vmatmul.mubr.msk.bf16.vlgmr.msra.gmra.mxu0 %vm237_vm2, %v1579_v19  ;;  %1652 = vmatmul.mubr.msk.bf16.vlgmr.msra.gmra.mxu1 %vm237_vm2, %v1579_v19  ;;  %v1185_v26 = vsel %vm241_vm1, %v1178_v23, 0 }
  0xc2   : > { %1225 = vmatprep.mubr.bf16.mxu0 %v1819_v5  ;;  %1657 = vmatprep.mubr.msk.bf16.mxu1 %vm1820_vm0, %v1818_v3 }
  0xc3   : > { %v1174_v24 = vpop.permute.xlu0 %1173  ;;  %v1176_v27 = vpop.permute.xlu1 %1175 }
  0xc4   : > { %v1179_v25 = vsel %vm1177_vm9, %v1172_v22, %v1174_v24  ;;  %v1180_v28 = vsel %vm1177_vm9, %v1174_v24, %v1176_v27 }
  0xc5   : > { %1584 = vmatprep.subr.msk.bf16.mxu0 %vm241_vm1, %v1179_v25  ;;  %v1191_v30 = vsel %vm241_vm1, %v1180_v28, 0 }
  0xc6   : > { %1208 = vmatpush1.bf16.msra.mxu0 %v1185_v26  ;;  %1656 = vmatpush3.bf16.msra.mxu1 %v1191_v30 }
  0xc7   : > { %v1305_v31 = vpop.permute.xlu0 %1304  ;;  %v1307_v32 = vpop.permute.xlu1 %1306  ;;  %1661 = vmatprep.subr.bf16.mxu1 %v1818_v3 }
  0xc8   : > { %v1313_v33 = vsel %vm1312_vm10, %v1305_v31, %v1307_v32 }
  0xc9   : > { %1585 = vmatmul.mubr.msk.bf16.vlgmr.msra.gmra.mxu0 %vm237_vm2, %v1583_v29  ;;  %1658 = vmatmul.mubr.msk.bf16.vlgmr.msra.gmra.mxu1 %vm237_vm2, %v1583_v29  ;;  %v1320_v36 = vsel %vm241_vm1, %v1313_v33, 0 }
  0xca   : > { %1360 = vmatprep.mubr.bf16.mxu0 %v1819_v5  ;;  %1663 = vmatprep.mubr.msk.bf16.mxu1 %vm1820_vm0, %v1818_v3 }
  0xcb   : > { %v1309_v34 = vpop.permute.xlu0 %1308  ;;  %v1311_v37 = vpop.permute.xlu1 %1310 }
  0xcc   : > { %v1314_v35 = vsel %vm1312_vm10, %v1307_v32, %v1309_v34  ;;  %v1315_v38 = vsel %vm1312_vm10, %v1309_v34, %v1311_v37 }
  0xcd   : > { %1588 = vmatprep.subr.msk.bf16.mxu0 %vm241_vm1, %v1314_v35  ;;  %v1326_v5 = vsel %vm241_vm1, %v1315_v38, 0 }
  0xce   : > { %1343 = vmatpush1.bf16.msra.mxu0 %v1320_v36  ;;  %1662 = vmatpush3.bf16.msra.mxu1 %v1326_v5 }
  0xd1   : > { %1589 = vmatmul.mubr.msk.bf16.vlgmr.msra.gmra.mxu0 %vm237_vm2, %v1587_v39  ;;  %1664 = vmatmul.mubr.msk.bf16.vlgmr.msra.gmra.mxu1 %vm237_vm2, %v1587_v39 }
  0xe2   : > { %v326_v3 = vpop.f32.mrf.mxu1 }
  0xe3   : > { %v285_v40 = vpop.f32.mrf.mxu0 }
  0xe4   : > { %v1617_v42 = vpop.f32.mrf.mxu1 }
  0xe5   : > { %v287_v41 = vpop.f32.mrf.mxu0 }
  0xe6   : > { %v329_v44 = vpop.f32.mrf.mxu1 }
  0xe7   : > { %v289_v43 = vpop.f32.mrf.mxu0 }
  0xe8   : > { %v1618_v46 = vpop.f32.mrf.mxu1 }
  0xe9   : > { %v290_v45 = vpop.f32.mrf.mxu0 }
 0x159   : > { %v417_v47 = vpop.f32.mrf.mxu0  ;;  %v458_v49 = vpop.f32.mrf.mxu1 }
 0x15a   : > { %v464_v28 = vadd.f32 %v417_v47, %v285_v40  ;;  %v466_v32 = vadd.f32 %v458_v49, %v326_v3 }
 0x15b   : > { %v419_v48 = vpop.f32.mrf.mxu0  ;;  %v1623_v51 = vpop.f32.mrf.mxu1 }
 0x15c   : > { %v465_v31 = vadd.f32 %v419_v48, %v287_v41 }
 0x15d   : > { %v421_v50 = vpop.f32.mrf.mxu0  ;;  %v461_v53 = vpop.f32.mrf.mxu1 }
 0x15f   : > { %v422_v52 = vpop.f32.mrf.mxu0  ;;  %v1624_v54 = vpop.f32.mrf.mxu1 }
 0x161   : > { %v552_v55 = vpop.f32.mrf.mxu0  ;;  %v593_v57 = vpop.f32.mrf.mxu1 }
 0x162   : > { %v599_v33 = vadd.f32 %v552_v55, %v464_v28  ;;  %v601_v37 = vadd.f32 %v593_v57, %v466_v32  ;;  %v1422_v57 = vpop.permute.xlu0 %1421 }
 0x163   : > { %v554_v56 = vpop.f32.mrf.mxu0  ;;  %v1629_v59 = vpop.f32.mrf.mxu1 }
 0x164   : > { %v600_v36 = vadd.f32 %v554_v56, %v465_v31 }
 0x165   : > { %v556_v58 = vpop.f32.mrf.mxu0  ;;  %v596_v61 = vpop.f32.mrf.mxu1 }
 0x167   : > { %v557_v60 = vpop.f32.mrf.mxu0  ;;  %v1630_v62 = vpop.f32.mrf.mxu1 }
 0x169   : > { %v687_v63 = vpop.f32.mrf.mxu0  ;;  %v728_v1 = vpop.f32.mrf.mxu1 }
 0x16a   : > { %v734_v38 = vadd.f32 %v687_v63, %v599_v33  ;;  %v736_v43 = vadd.f32 %v728_v1, %v601_v37 }
 0x16b   : > { %v689_v0 = vpop.f32.mrf.mxu0  ;;  %v1635_v4 = vpop.f32.mrf.mxu1 }
 0x16c   : > { %v735_v42 = vadd.f32 %v689_v0, %v600_v36 }
 0x16d   : > { %v691_v2 = vpop.f32.mrf.mxu0  ;;  %v731_v7 = vpop.f32.mrf.mxu1 }
 0x16f   : > { %v692_v6 = vpop.f32.mrf.mxu0  ;;  %v1636_v8 = vpop.f32.mrf.mxu1 }
 0x171   : > { %v822_v9 = vpop.f32.mrf.mxu0  ;;  %v863_v11 = vpop.f32.mrf.mxu1 }
 0x172   : > { %v869_v44 = vadd.f32 %v822_v9, %v734_v38  ;;  %v871_v41 = vadd.f32 %v863_v11, %v736_v43 }
 0x173   : > { %v824_v10 = vpop.f32.mrf.mxu0  ;;  %v1641_v13 = vpop.f32.mrf.mxu1 }
 0x174   : > { %v870_v40 = vadd.f32 %v824_v10, %v735_v42 }
 0x175   : > { %v826_v12 = vpop.f32.mrf.mxu0  ;;  %v866_v15 = vpop.f32.mrf.mxu1 }
 0x177   : > { %v827_v14 = vpop.f32.mrf.mxu0  ;;  %v1642_v16 = vpop.f32.mrf.mxu1 }
 0x179   : > { %v957_v17 = vpop.f32.mrf.mxu0  ;;  %v998_v19 = vpop.f32.mrf.mxu1 }
 0x17a   : > { %v1004_v47 = vadd.f32 %v957_v17, %v869_v44  ;;  %v1006_v50 = vadd.f32 %v998_v19, %v871_v41 }
 0x17b   : > { %v959_v18 = vpop.f32.mrf.mxu0  ;;  %v1647_v21 = vpop.f32.mrf.mxu1 }
 0x17c   : > { %v1005_v49 = vadd.f32 %v959_v18, %v870_v40 }
 0x17d   : > { %v961_v20 = vpop.f32.mrf.mxu0  ;;  %v1001_v23 = vpop.f32.mrf.mxu1 }
 0x17f   : > { %v962_v22 = vpop.f32.mrf.mxu0  ;;  %v1648_v24 = vpop.f32.mrf.mxu1 }
 0x181   : > { %v1092_v25 = vpop.f32.mrf.mxu0  ;;  %v1133_v27 = vpop.f32.mrf.mxu1 }
 0x182   : > { %v1139_v51 = vadd.f32 %v1092_v25, %v1004_v47  ;;  %v1141_v55 = vadd.f32 %v1133_v27, %v1006_v50 }
 0x183   : > { %v1094_v26 = vpop.f32.mrf.mxu0  ;;  %v1653_v30 = vpop.f32.mrf.mxu1 }
 0x184   : > { %v1140_v54 = vadd.f32 %v1094_v26, %v1005_v49 }
 0x185   : > { %v1096_v29 = vpop.f32.mrf.mxu0  ;;  %v1136_v35 = vpop.f32.mrf.mxu1 }
 0x187   : > { %v1097_v34 = vpop.f32.mrf.mxu0  ;;  %v1654_v39 = vpop.f32.mrf.mxu1 }
 0x189   : > { %v1227_v5 = vpop.f32.mrf.mxu0  ;;  %v1268_v46 = vpop.f32.mrf.mxu1 }
 0x18a   : > { %v1274_v56 = vadd.f32 %v1227_v5, %v1139_v51  ;;  %v1276_v61 = vadd.f32 %v1268_v46, %v1141_v55 }
 0x18b   : > { %v1229_v45 = vpop.f32.mrf.mxu0  ;;  %v1659_v48 = vpop.f32.mrf.mxu1 }
 0x18c   : > { %v1275_v60 = vadd.f32 %v1229_v45, %v1140_v54 }
 0x18d   : > { %v1231_v3 = vpop.f32.mrf.mxu0  ;;  %v1271_v53 = vpop.f32.mrf.mxu1 }
 0x18f   : > { %v1232_v52 = vpop.f32.mrf.mxu0  ;;  %v1660_v58 = vpop.f32.mrf.mxu1 }
 0x191   : > { %v1362_v59 = vpop.f32.mrf.mxu0  ;;  %v1403_v0 = vpop.f32.mrf.mxu1 }
 0x192   : > { %v1409_v62 = vadd.f32 %v1362_v59, %v1274_v56  ;;  %v1411_v2 = vadd.f32 %v1403_v0, %v1276_v61 }
 0x193   : > { %v1364_v63 = vpop.f32.mrf.mxu0  ;;  %v1665_v7 = vpop.f32.mrf.mxu1 }
 0x194   : > { %v1410_v1 = vadd.f32 %v1364_v63, %v1275_v60  ;;  %v1424_v4 = vmul.f32 %v1422_v57, %v1409_v62  ;;  %v1426_v9 = vmul.f32 %v1422_v57, %v1411_v2 }
 0x195   : > { %v1366_v6 = vpop.f32.mrf.mxu0  ;;  %v1406_v11 = vpop.f32.mrf.mxu1 }
 0x196   : > { %v1425_v8 = vmul.f32 %v1422_v57, %v1410_v1  ;;  %1427 = vst [vmem:[%s203_s28] sm:$0xff] %v1424_v4  ;;  %1429 = vst [vmem:[%s203_s28 + $0x10] sm:$0xff] %v1426_v9 }
 0x197   : > { %v1367_v10 = vpop.f32.mrf.mxu0  ;;  %v1666_v12 = vpop.f32.mrf.mxu1 }
 0x198   : > { %1428 = vst [vmem:[%s203_s28 + $0x8] sm:$0xff] %v1425_v8 }
 0x199   : > { %1752 = shalt.err (!%p1749_p5)
}
 0x19a   : > { %s1753_s10 = scalar_lea.hbm %s2029_s5, 384  ;;  %s1757_s19 = scalar_lea.hbm %s2080_s3, 768 }
 0x19b   : > { %p1754_p6 = scmp.ne.s32.totalorder %s2029_s5, %s1753_s10  ;;  %p1758_p10 = scmp.lt.s32.totalorder %s2029_s5, %s2080_s3 }
 0x19c   : > { %p1759_p11 = scmp.lt.s32.totalorder %s1757_s19, %s1753_s10 }
 0x19d   : > { %p1755_p7 = pnand %p1754_p6, %p1890_p4 }
 0x19e   : > { %p1760_p12 = por %p1759_p11, %p1758_p10 }
 0x19f   : > { %p1756_p9 = pneg %p1755_p7 }
 0x1a1   : > { %p1761_p13 = pnand %p1760_p12, %p1756_p9 }
 0x1a3   : > { %1764 = shalt.err (!%p1761_p13)
}
 0x1a4   : > { %1669 = dma.vmem_to_hbm [thread:$0]  (%p1890_p4), %s2031_s29, 384, %s2029_s5, %s1431_s15  }
 0x1a5 PF: > { %p1675_p0 = scmp.ge.s32.totalorder %s1815_s17, 2  ;;  %s1459_s26 = sand.u32 1, %s1795_s12  }
 0x1a6   : > { %s1460_s27 = scalar_lea.sflag [#allocation3], %s1459_s26 }
 0x1a7   : > { %p1672_p1 = pnand %p1675_p0, %p1897_p8 }
 0x1a9   : > { %p1673_p2 = pneg %p1672_p1 }
 0x1ab   : > { %1790 = dma.done.wait (%p1673_p2), %s1460_s27, 384  }
 0x1ac   : > { %1792 = vsyncadd (%p1673_p2), %s1460_s27, 4294966912  ;;  %s16_s17 = sadd.s32 1, %s1815_s17   ;;  %s2083_s12 = smov %s1799_s13 }
 0x1ad   : > { %p13_p3 = scmp.ge.s32.totalorder %s16_s17, 4   ;;  %s2084_s13 = smov %s1803_s14 }
 0x1ae   : > { %s2085_s14 = smov %s1903_s25  ;;  %s2086_s15 = smov %s1811_s16 }
 0x1af   : > { %s2087_s16 = smov %s2089_s20  ;;  %15 = sbr.rel (!%p13_p3) target bundleno = 4 (0x4), region = 81 }
 0x1b4   :  { %1465 = vsyncpa [#allocation3], 1 }
 0x1b5   :  { %1467 = vsyncpa [#allocation3 + $0x1], 1 }

</bundles_post_ra>
